<compile_context>
chip_gen: v6e
topology: v6e:2x2x1
jax: 0.10.0
libtpu: 0.0.40
codegen_flags: <defaults>
</compile_context>

<pallas_src>
import functools

import jax
import jax.numpy as jnp
from jax.experimental import pallas as pl
from jax.experimental.pallas import tpu as pltpu

KERNEL_SIZE = 5  # must be odd (the PyTorch module shape-mismatches otherwise)


def _series_decomp_kernel(x_ref, seasonal_ref, trend_ref, *, kernel_size):
    """x_ref: (Bt, L, Ct) block — time L on sublanes, channels C on lanes."""
    pad = (kernel_size - 1) // 2
    x = x_ref[...]
    bt, L, ct = x.shape
    first = x[:, 0:1, :]          # (Bt, 1, Ct)
    last = x[:, L - 1:L, :]       # (Bt, 1, Ct)

    acc = x.astype(jnp.float32)   # center tap, f32 accumulation
    for d in range(1, pad + 1):
        if d < L:
            # x[clamp(t + d)]  (forward shift, edge-replicated on the right)
            fwd = jnp.concatenate(
                [x[:, d:, :], jnp.broadcast_to(last, (bt, d, ct))], axis=1)
            # x[clamp(t - d)]  (backward shift, edge-replicated on the left)
            bwd = jnp.concatenate(
                [jnp.broadcast_to(first, (bt, d, ct)), x[:, :L - d, :]], axis=1)
        else:
            # Degenerate short series: every clamped index lands on an endpoint.
            fwd = jnp.broadcast_to(last, x.shape)
            bwd = jnp.broadcast_to(first, x.shape)
        acc = acc + fwd.astype(jnp.float32) + bwd.astype(jnp.float32)

    trend = (acc * (1.0 / kernel_size)).astype(x.dtype)
    trend_ref[...] = trend
    seasonal_ref[...] = x - trend


def _choose_tiles(B, L, C, itemsize, target_block_bytes):
    """Pick (batch tile, channel tile).  L is never tiled (no halo handling needed)."""
    per_batch_bytes = L * C * itemsize
    if per_batch_bytes <= target_block_bytes:
        bt = max(1, min(B, target_block_bytes // per_batch_bytes))
        tc = C
    else:
        bt = 1
        if C > 128:
            # Channel tiles must be multiples of 128 lanes (or the full C).
            tc = ((target_block_bytes // (L * itemsize)) // 128) * 128
            tc = max(128, tc)
            if tc >= C:
                tc = C
        else:
            # Long L with narrow C: keep the whole series in one block.
            # TODO(synk): overlapping (halo) L-tiling for extremely long single series.
            tc = C
    return bt, tc


def series_decomp(x, kernel_size: int = KERNEL_SIZE, *, target_block_bytes: int = 4 << 20):
    """x: (B, L, C) -> (x_seasonal, x_trend), both (B, L, C). Matches SeriesDecomp(kernel_size)."""
    if kernel_size % 2 != 1:
        raise ValueError("series_decomp requires an odd kernel_size (the PyTorch module "
                         "would shape-mismatch for even kernel_size).")
    B, L, C = x.shape
    itemsize = x.dtype.itemsize

    bt, tc = _choose_tiles(B, L, C, itemsize, target_block_bytes)
    grid = (pl.cdiv(B, bt), pl.cdiv(C, tc))

    block_bytes = bt * L * tc * itemsize
    # 2x double-buffered input + 2 double-buffered outputs + ~4 f32-block temporaries.
    vmem_need = 6 * block_bytes + 4 * (bt * L * tc * 4) + (2 << 20)
    vmem_limit = int(min(max(vmem_need, 16 << 20), 48 << 20))  # safe below v7x's 64 MiB

    spec = pl.BlockSpec((bt, L, tc), lambda b, c: (b, 0, c))

    kernel = functools.partial(_series_decomp_kernel, kernel_size=kernel_size)
    seasonal, trend = pl.pallas_call(
        kernel,
        out_shape=(jax.ShapeDtypeStruct((B, L, C), x.dtype),
                   jax.ShapeDtypeStruct((B, L, C), x.dtype)),
        grid=grid,
        in_specs=[spec],
        out_specs=(spec, spec),
        compiler_params=pltpu.CompilerParams(
            dimension_semantics=("parallel", "parallel"),
            vmem_limit_bytes=vmem_limit),
        cost_estimate=pl.CostEstimate(
            flops=(kernel_size + 2) * B * L * C,
            transcendentals=0,
            bytes_accessed=3 * B * L * C * itemsize),
    )(x)
    return seasonal, trend


def _reference(x, kernel_size):
    # Pure-JAX reference mirroring the PyTorch module.
    pad = (kernel_size - 1) // 2
    left = jnp.repeat(x[:, 0:1, :], pad, axis=1)
    right = jnp.repeat(x[:, -1:, :], pad, axis=1)
    xp = jnp.concatenate([left, x, right], axis=1)
    L = x.shape[1]
    trend = sum(xp[:, j:j + L, :] for j in range(kernel_size)) / kernel_size
    return x - trend, trend


if __name__ == "__main__":
    key = jax.random.PRNGKey(0)
    B, L, C = 2, 16, 8
    x = jax.random.normal(key, (B, L, C), dtype=jnp.float32)

    seasonal, trend = series_decomp(x)
    jax.block_until_ready((seasonal, trend))

    seasonal_ref, trend_ref = _reference(x, KERNEL_SIZE)
    assert seasonal.shape == x.shape and trend.shape == x.shape
    assert jnp.allclose(trend, trend_ref, atol=1e-5, rtol=1e-5)
    assert jnp.allclose(seasonal, seasonal_ref, atol=1e-5, rtol=1e-5)

    print("KERNEL_OK")
</pallas_src>

<mosaic_0001>
module attributes {stable_mosaic.version = 11 : i64} {
  func.func @_series_decomp_kernel(%arg0: i32, %arg1: i32, %arg2: memref<2x16x8xf32, #tpu.memory_space<vmem>>, %arg3: memref<2x16x8xf32, #tpu.memory_space<vmem>>, %arg4: memref<2x16x8xf32, #tpu.memory_space<vmem>>) attributes {dimension_semantics = [#tpu.dimension_semantics<parallel>, #tpu.dimension_semantics<parallel>], iteration_bounds = array<i64: 1, 1>, scalar_prefetch = 0 : i64, scratch_operands = 0 : i64, tpu.core_type = #tpu.core_type<tc>, window_params = [{transform_indices = @transform_0, window_bounds = array<i64: 2, 16, 8>}, {transform_indices = @transform_1, window_bounds = array<i64: 2, 16, 8>}, {transform_indices = @transform_2, window_bounds = array<i64: 2, 16, 8>}]} {
    %c0 = arith.constant 0 : index
    %c0_0 = arith.constant 0 : index
    %c0_1 = arith.constant 0 : index
    %0 = vector.load %arg2[%c0, %c0_0, %c0_1] : memref<2x16x8xf32, #tpu.memory_space<vmem>>, vector<2x16x8xf32>
    %1 = vector.extract_strided_slice %0 {offsets = [0, 0, 0], sizes = [2, 1, 8], strides = [1, 1, 1]} : vector<2x16x8xf32> to vector<2x1x8xf32>
    %2 = vector.extract_strided_slice %0 {offsets = [0, 15, 0], sizes = [2, 1, 8], strides = [1, 1, 1]} : vector<2x16x8xf32> to vector<2x1x8xf32>
    %3 = vector.extract_strided_slice %0 {offsets = [0, 1, 0], sizes = [2, 15, 8], strides = [1, 1, 1]} : vector<2x16x8xf32> to vector<2x15x8xf32>
    %4 = tpu.concatenate %3, %2 in 1 : vector<2x15x8xf32>, vector<2x1x8xf32> -> vector<2x16x8xf32>
    %5 = vector.extract_strided_slice %0 {offsets = [0, 0, 0], sizes = [2, 15, 8], strides = [1, 1, 1]} : vector<2x16x8xf32> to vector<2x15x8xf32>
    %6 = tpu.concatenate %1, %5 in 1 : vector<2x1x8xf32>, vector<2x15x8xf32> -> vector<2x16x8xf32>
    %7 = arith.addf %0, %4 : vector<2x16x8xf32>
    %8 = arith.addf %7, %6 : vector<2x16x8xf32>
    %9 = vector.extract_strided_slice %0 {offsets = [0, 2, 0], sizes = [2, 14, 8], strides = [1, 1, 1]} : vector<2x16x8xf32> to vector<2x14x8xf32>
    %10 = vector.shape_cast %2 : vector<2x1x8xf32> to vector<2x1x8xf32>
    %11 = vector.broadcast %10 : vector<2x1x8xf32> to vector<2x2x8xf32>
    %12 = tpu.concatenate %9, %11 in 1 : vector<2x14x8xf32>, vector<2x2x8xf32> -> vector<2x16x8xf32>
    %13 = vector.shape_cast %1 : vector<2x1x8xf32> to vector<2x1x8xf32>
    %14 = vector.broadcast %13 : vector<2x1x8xf32> to vector<2x2x8xf32>
    %15 = vector.extract_strided_slice %0 {offsets = [0, 0, 0], sizes = [2, 14, 8], strides = [1, 1, 1]} : vector<2x16x8xf32> to vector<2x14x8xf32>
    %16 = tpu.concatenate %14, %15 in 1 : vector<2x2x8xf32>, vector<2x14x8xf32> -> vector<2x16x8xf32>
    %17 = arith.addf %8, %12 : vector<2x16x8xf32>
    %18 = arith.addf %17, %16 : vector<2x16x8xf32>
    %cst = arith.constant 2.000000e-01 : f32
    %19 = vector.broadcast %cst : f32 to vector<2x16x8xf32>
    %20 = arith.mulf %18, %19 : vector<2x16x8xf32>
    %c0_2 = arith.constant 0 : index
    %c0_3 = arith.constant 0 : index
    %c0_4 = arith.constant 0 : index
    %21 = vector.load %arg4[%c0_2, %c0_3, %c0_4] : memref<2x16x8xf32, #tpu.memory_space<vmem>>, vector<2x16x8xf32>
    tpu.vector_store %arg4[%c0_2, %c0_3, %c0_4], %20 {strides = array<i32>} : memref<2x16x8xf32, #tpu.memory_space<vmem>>, vector<2x16x8xf32>,
    %22 = arith.subf %0, %20 : vector<2x16x8xf32>
    %c0_5 = arith.constant 0 : index
    %c0_6 = arith.constant 0 : index
    %c0_7 = arith.constant 0 : index
    %23 = vector.load %arg3[%c0_5, %c0_6, %c0_7] : memref<2x16x8xf32, #tpu.memory_space<vmem>>, vector<2x16x8xf32>
    tpu.vector_store %arg3[%c0_5, %c0_6, %c0_7], %22 {strides = array<i32>} : memref<2x16x8xf32, #tpu.memory_space<vmem>>, vector<2x16x8xf32>,
    return
  }
  func.func @transform_0(%arg0: i32, %arg1: i32) -> (i32, i32, i32) {
    %c0_i32 = arith.constant 0 : i32
    %c0_i32_0 = arith.constant 0 : i32
    return %arg0, %c0_i32, %arg1 : i32, i32, i32
  }
  func.func @transform_1(%arg0: i32, %arg1: i32) -> (i32, i32, i32) {
    %c0_i32 = arith.constant 0 : i32
    %c0_i32_0 = arith.constant 0 : i32
    return %arg0, %c0_i32, %arg1 : i32, i32, i32
  }
  func.func @transform_2(%arg0: i32, %arg1: i32) -> (i32, i32, i32) {
    %c0_i32 = arith.constant 0 : i32
    %c0_i32_0 = arith.constant 0 : i32
    return %arg0, %c0_i32, %arg1 : i32, i32, i32
  }
}

</mosaic_0001>

<bundles_post_ra>
// kernel: tpu_custom_call.1
= control target key start
LH: loop header
LB: loop body
LE: loop exit
PB: predicated region body
PF: predicated region fallthrough
CT: control target
= control target key end

     0   :  { %v52_v0 = vlaneseq  ;;  %vm18_vm0 = vcmask 1046528   ;;  %vm31_vm1 = vcmask 1040384   ;;  %vm60_vm2 = vcmask 1045504   ;;  %s232_s0 = inlined_call_operand.vmem [shape: f32[2,16,8], index: 0, kind: input, shape index: {}]   ;;  %s233_s2 = inlined_call_operand.vmem [shape: f32[2,16,8], index: 2, kind: output, shape index: {1}]   ;;  %s234_s1 = inlined_call_operand.vmem [shape: f32[2,16,8], index: 1, kind: output, shape index: {0}]  }
   0x1   :  { %v145_v1 = vld [vmem:[%s232_s0] sm:$0xff]  ;;  %v150_v2 = vld [vmem:[%s232_s0 + $0x8] sm:$0xff]  ;;  %vm81_vm3 = vcmask 1041408   ;;  %v162_v11 = vld [vmem:[%s232_s0 + $0x10] sm:$0xff]  ;;  %vm106_vm4 = vcmask 64512  }
   0x2   :  { %v19_v3 = vrot.slane %v145_v1, 1  ;;  %v20_v4 = vrot.slane %v150_v2, 1  ;;  %v32_v5 = vrot.slane %v145_v1, 7  ;;  %v53_v6 = vshrl.u32 %v52_v0, 7  ;;  %v13_v16 = vld [vmem:[%s232_s0 + $0x18] sm:$0xff] }
   0x3   :  { %v61_v7 = vrot.slane %v145_v1, 2  ;;  %v62_v8 = vrot.slane %v150_v2, 2  ;;  %v82_v9 = vrot.slane %v145_v1, 6  ;;  %v33_v10 = vrot.slane %v150_v2, 7 }
   0x4   :  { %v21_v12 = vsel %vm18_vm0, %v19_v3, %v20_v4  ;;  %v42_v13 = vsel %vm31_vm1, %v145_v1, %v32_v5  ;;  %v75_v14 = vsub.s32 0, %v53_v6  ;;  %v29_v15 = vsel %vm18_vm0, %v20_v4, %v150_v2 }
   0x5   :  { %v44_v17 = vadd.f32 %v21_v12, %v145_v1  ;;  %v63_v18 = vsel %vm60_vm2, %v61_v7, %v62_v8  ;;  %v34_v19 = vsel %vm31_vm1, %v32_v5, %v33_v10  ;;  %v45_v20 = vadd.f32 %v29_v15, %v150_v2 }
   0x6   :  { %v76_v21 = vrot.slane %v145_v1, %v75_v14  ;;  %v54_v22 = vsub.s32 7, %v53_v6  ;;  %v83_v23 = vrot.slane %v150_v2, 6  ;;  %v22_v24 = vrot.slane %v162_v11, 1 }
   0x7   :  { %v48_v25 = vadd.f32 %v44_v17, %v42_v13  ;;  %v49_v26 = vadd.f32 %v45_v20, %v34_v19  ;;  %v23_v27 = vrot.slane %v13_v16, 1  ;;  %v35_v28 = vrot.slane %v162_v11, 7 }
   0x8   :  { %v92_v29 = vsel %vm81_vm3, %v76_v21, %v82_v9  ;;  %v55_v30 = vrot.slane %v150_v2, %v54_v22  ;;  %v84_v31 = vsel %vm81_vm3, %v82_v9, %v83_v23  ;;  %v64_v32 = vrot.slane %v162_v11, 2 }
   0x9   :  { %v94_v33 = vadd.f32 %v63_v18, %v48_v25  ;;  %v24_v34 = vsel %vm18_vm0, %v22_v24, %v23_v27  ;;  %v43_v35 = vsel %vm31_vm1, %v162_v11, %v35_v28  ;;  %v65_v36 = vrot.slane %v13_v16, 2 }
   0xa   :  { %v71_v37 = vsel %vm60_vm2, %v62_v8, %v55_v30  ;;  %v46_v38 = vadd.f32 %v24_v34, %v162_v11  ;;  %v80_v39 = vrot.slane %v162_v11, %v75_v14  ;;  %v85_v40 = vrot.slane %v162_v11, 6 }
   0xb   :  { %v98_v41 = vadd.f32 %v94_v33, %v92_v29  ;;  %v95_v42 = vadd.f32 %v71_v37, %v49_v26  ;;  %v66_v43 = vsel %vm60_vm2, %v64_v32, %v65_v36  ;;  %v30_v44 = vsel %vm18_vm0, %v23_v27, %v13_v16 }
   0xc   :  { %v50_v45 = vadd.f32 %v46_v38, %v43_v35  ;;  %v93_v46 = vsel %vm81_vm3, %v80_v39, %v85_v40  ;;  %v36_v47 = vrot.slane %v13_v16, 7  ;;  %v47_v48 = vadd.f32 %v30_v44, %v13_v16 }
   0xd   :  { %v102_v49 = vmul.f32 0.2, %v98_v41  ;;  %v99_v50 = vadd.f32 %v95_v42, %v84_v31  ;;  %v59_v51 = vrot.slane %v13_v16, %v54_v22  ;;  %v86_v52 = vrot.slane %v13_v16, 6 }
   0xe   :  { %v96_v53 = vadd.f32 %v66_v43, %v50_v45  ;;  %v37_v54 = vsel %vm31_vm1, %v35_v28, %v36_v47 }
   0xf   :  { %107 = vst.msk [vmem:[%s233_s2] sm:$0xff] %vm106_vm4, %v102_v49  ;;  %v103_v55 = vmul.f32 0.2, %v99_v50  ;;  %v51_v56 = vadd.f32 %v47_v48, %v37_v54  ;;  %v72_v57 = vsel %vm60_vm2, %v65_v36, %v59_v51  ;;  %v87_v59 = vsel %vm81_vm3, %v85_v40, %v86_v52 }
  0x10   :  { %v100_v58 = vadd.f32 %v96_v53, %v93_v46  ;;  %v111_v60 = vsub.f32 %v145_v1, %v102_v49 }
  0x11   :  { %108 = vst.msk [vmem:[%s233_s2 + $0x8] sm:$0xff] %vm106_vm4, %v103_v55  ;;  %v97_v61 = vadd.f32 %v72_v57, %v51_v56  ;;  %v112_v62 = vsub.f32 %v150_v2, %v103_v55 }
  0x12   :  { %v104_v63 = vmul.f32 0.2, %v100_v58  ;;  %115 = vst.msk [vmem:[%s234_s1] sm:$0xff] %vm106_vm4, %v111_v60 }
  0x13   :  { %v101_v0 = vadd.f32 %v97_v61, %v87_v59  ;;  %116 = vst.msk [vmem:[%s234_s1 + $0x8] sm:$0xff] %vm106_vm4, %v112_v62 }
  0x14   :  { %109 = vst.msk [vmem:[%s233_s2 + $0x10] sm:$0xff] %vm106_vm4, %v104_v63  ;;  %v113_v1 = vsub.f32 %v162_v11, %v104_v63 }
  0x15   :  { %v105_v2 = vmul.f32 0.2, %v101_v0 }
  0x16   :  { %117 = vst.msk [vmem:[%s234_s1 + $0x10] sm:$0xff] %vm106_vm4, %v113_v1 }
  0x17   :  { %110 = vst.msk [vmem:[%s233_s2 + $0x18] sm:$0xff] %vm106_vm4, %v105_v2  ;;  %v114_v3 = vsub.f32 %v13_v16, %v105_v2 }
  0x19   :  { %118 = vst.msk [vmem:[%s234_s1 + $0x18] sm:$0xff] %vm106_vm4, %v114_v3 }

</bundles_post_ra>
